<compile_context>
chip_gen: v7x
topology: tpu7x:2x2x1
jax: 0.10.0
libtpu: 0.0.40
codegen_flags: <defaults>
</compile_context>

<pallas_src>
import functools

import jax
import jax.numpy as jnp
from jax.experimental import pallas as pl
from jax.experimental.pallas import tpu as pltpu


def _round_up(n, m):
    return ((n + m - 1) // m) * m


# ----------------------------------------------------------------------------
# Kernel
# ----------------------------------------------------------------------------
def _lstm_pred_kernel(x_ref, p_ref, out_ref, *, I, H, w0_off, w1_off, fc_off):
    x = x_ref[...]                                            # (N, I) f32

    # ----- LSTM layer 0 (single timestep, h0 = c0 = 0) -----
    # slab rows [w0_off, w0_off+I)   = W_ih_l0^T, gate columns [i, g, o]
    # slab row   w0_off+I            = b_ih_l0 + b_hh_l0 (same gate packing)
    w0 = p_ref[w0_off:w0_off + I, :]                          # (I, 3H)
    b0 = p_ref[w0_off + I:w0_off + I + 1, :]                  # (1, 3H)
    g0 = jnp.dot(x, w0, preferred_element_type=jnp.float32) + b0
    s0 = jax.nn.sigmoid(g0)                                   # one full-slab EUP pass
    t0 = jnp.tanh(g0)                                         # one full-slab EUP pass
    #        o-gate                 i-gate        g (cell input)
    h0 = s0[:, 2 * H:3 * H] * jnp.tanh(s0[:, 0:H] * t0[:, H:2 * H])  # = hidden[-2]

    # ----- LSTM layer 1 (input = h0) -----
    w1 = p_ref[w1_off:w1_off + H, :]                          # (H, 3H)
    b1 = p_ref[w1_off + H:w1_off + H + 1, :]                  # (1, 3H)
    g1 = jnp.dot(h0, w1, preferred_element_type=jnp.float32) + b1
    s1 = jax.nn.sigmoid(g1)
    t1 = jnp.tanh(g1)
    h1 = s1[:, 2 * H:3 * H] * jnp.tanh(s1[:, 0:H] * t1[:, H:2 * H])  # = hidden[-1]

    # ----- fc(cat([h0, h1], dim=1)) as VPU mul + lane reduce -----
    # slab row fc_off   = W_fc[:, :H],  row fc_off+1 = W_fc[:, H:],
    # slab row fc_off+2 = [b_fc, 0, ..., 0]  (bias lands once in the reduce)
    fc0 = p_ref[fc_off:fc_off + 1, 0:H]                       # (1, H)
    fc1 = p_ref[fc_off + 1:fc_off + 2, 0:H]                   # (1, H)
    fcb = p_ref[fc_off + 2:fc_off + 3, 0:H]                   # (1, H)
    prod = h0 * fc0 + h1 * fc1 + fcb
    out_col = jnp.sum(prod, axis=-1, keepdims=True)           # (N, 1)
    out_ref[...] = out_col.T.astype(out_ref.dtype)            # lane-dense (1, N) store


# ----------------------------------------------------------------------------
# Wrapper
# ----------------------------------------------------------------------------
def lstm_pred(x, slab, offs, hidden_dim):
    N, I = x.shape
    H = hidden_dim
    P = offs["rows"]
    L = 3 * H

    kernel = functools.partial(
        _lstm_pred_kernel, I=I, H=H,
        w0_off=offs["w0"], w1_off=offs["w1"], fc_off=offs["fc"])

    flops = 2 * N * I * 3 * H + 2 * N * H * 3 * H + 12 * N * H
    transcendentals = 2 * N * (2 * 3 * H + H)
    bytes_accessed = 4 * (N * I + P * L + N)

    out_row = pl.pallas_call(
        kernel,
        out_shape=jax.ShapeDtypeStruct((1, N), jnp.float32),
        grid=(1,),
        in_specs=[
            pl.BlockSpec((N, I), lambda i: (0, 0)),   # activations
            pl.BlockSpec((P, L), lambda i: (0, 0)),   # fused parameter slab
        ],
        out_specs=pl.BlockSpec((1, N), lambda i: (0, 0)),
        compiler_params=pltpu.CompilerParams(dimension_semantics=("arbitrary",)),
        cost_estimate=pl.CostEstimate(
            flops=flops,
            transcendentals=transcendentals,
            bytes_accessed=bytes_accessed),
    )(x, slab)

    # Module returns (N, 1); the relayout happens outside the kernel.
    return out_row.reshape(N, 1)


# ----------------------------------------------------------------------------
# Parameter packing (done once; PyTorch-shaped params -> single fused slab)
# ----------------------------------------------------------------------------
def pack_params(raw, input_size, hidden_dim):
    H = hidden_dim
    I = input_size
    L = 3 * H

    def gate_block(w_ih, b_ih, b_hh, rows):
        wt = w_ih.T                                   # (in, 4H), gates [i, f, g, o]
        # Drop the (dead) forget gate; keep [i, g, o].
        cols = jnp.concatenate(
            [wt[:, 0:H], wt[:, 2 * H:3 * H], wt[:, 3 * H:4 * H]], axis=1)
        b = b_ih + b_hh
        brow = jnp.concatenate(
            [b[0:H], b[2 * H:3 * H], b[3 * H:4 * H]])[None, :]
        blk = jnp.concatenate([cols, brow], axis=0)   # (in+1, 3H)
        return jnp.pad(blk, ((0, rows - blk.shape[0]), (0, 0)))

    seg0 = _round_up(I + 1, 8)   # layer-0 weights + bias row, 8-row aligned
    seg1 = _round_up(H + 1, 8)   # layer-1 weights + bias row
    seg2 = 8                     # fc rows

    w0_blk = gate_block(raw["w_ih_l0"], raw["b_ih_l0"], raw["b_hh_l0"], seg0)
    w1_blk = gate_block(raw["w_ih_l1"], raw["b_ih_l1"], raw["b_hh_l1"], seg1)

    w_fc, b_fc = raw["w_fc"], raw["b_fc"]
    fc_blk = jnp.zeros((seg2, L), jnp.float32)
    fc_blk = fc_blk.at[0, 0:H].set(w_fc[0, 0:H])
    fc_blk = fc_blk.at[1, 0:H].set(w_fc[0, H:2 * H])
    fc_blk = fc_blk.at[2, 0].set(b_fc[0])

    slab = jnp.concatenate([w0_blk, w1_blk, fc_blk], axis=0).astype(jnp.float32)
    offs = {"w0": 0, "w1": seg0, "fc": seg0 + seg1, "rows": seg0 + seg1 + seg2}
    return slab, offs


def init_params(key, input_size, hidden_dim):
    """Deterministic synthetic parameters with nn.LSTM / nn.Linear shapes."""
    H = hidden_dim
    bound = 1.0 / float(H) ** 0.5
    keys = jax.random.split(key, 10)
    u = lambda kk, shape: jax.random.uniform(kk, shape, jnp.float32, -bound, bound)

    raw = {
        "w_ih_l0": u(keys[0], (4 * H, input_size)),
        "w_hh_l0": u(keys[1], (4 * H, H)),
        "b_ih_l0": u(keys[2], (4 * H,)),
        "b_hh_l0": u(keys[3], (4 * H,)),
        "w_ih_l1": u(keys[4], (4 * H, H)),
        "w_hh_l1": u(keys[5], (4 * H, H)),
        "b_ih_l1": u(keys[6], (4 * H,)),
        "b_hh_l1": u(keys[7], (4 * H,)),
        "w_fc":    u(keys[8], (1, 2 * H)),
        "b_fc":    u(keys[9], (1,)),
    }
    slab, offs = pack_params(raw, input_size, H)
    return raw, slab, offs


# ----------------------------------------------------------------------------
# Pure-JAX reference doing the FULL PyTorch math (W_hh, forget gate, zero state)
# ----------------------------------------------------------------------------
def lstm_pred_ref(x, raw, hidden_dim):
    H = hidden_dim

    def cell(inp, w_ih, w_hh, b_ih, b_hh):
        N = inp.shape[0]
        h_prev = jnp.zeros((N, H), jnp.float32)
        c_prev = jnp.zeros((N, H), jnp.float32)
        g = inp @ w_ih.T + b_ih + h_prev @ w_hh.T + b_hh
        i = jax.nn.sigmoid(g[:, 0:H])
        f = jax.nn.sigmoid(g[:, H:2 * H])
        gg = jnp.tanh(g[:, 2 * H:3 * H])
        o = jax.nn.sigmoid(g[:, 3 * H:4 * H])
        c = f * c_prev + i * gg
        return o * jnp.tanh(c)

    h0 = cell(x, raw["w_ih_l0"], raw["w_hh_l0"], raw["b_ih_l0"], raw["b_hh_l0"])
    h1 = cell(h0, raw["w_ih_l1"], raw["w_hh_l1"], raw["b_ih_l1"], raw["b_hh_l1"])
    hidden = jnp.concatenate([h0, h1], axis=1)
    return hidden @ raw["w_fc"].T + raw["b_fc"][None, :]


if __name__ == "__main__":
    N = 8            # len(seq) -> batch dimension of the single-timestep LSTM
    INPUT_SIZE = 17  # hard-coded by seq.view(1, len(seq), 17)
    HIDDEN = 32

    key = jax.random.PRNGKey(0)
    k_x, k_p = jax.random.split(key)
    x = jax.random.normal(k_x, (N, INPUT_SIZE), dtype=jnp.float32)
    raw, slab, offs = init_params(k_p, INPUT_SIZE, HIDDEN)

    out = lstm_pred(x, slab, offs, HIDDEN)
    out = jax.block_until_ready(out)

    ref = lstm_pred_ref(x, raw, HIDDEN)
    assert out.shape == (N, 1), out.shape
    assert jnp.allclose(out, ref, atol=1e-5, rtol=1e-5), (out, ref)

    # TODO(synk): if N ever grows large, tile the batch (grid over N with a
    # "parallel" dimension_semantics axis) to use v7x's second TensorCore and
    # size tiles for its 64 MiB VMEM; at N=8 a single invocation is optimal.

    print("KERNEL_OK")
</pallas_src>

<mosaic_0001>
module attributes {stable_mosaic.version = 11 : i64} {
  func.func @_lstm_pred_kernel(%arg0: i32, %arg1: memref<8x17xf32, #tpu.memory_space<vmem>>, %arg2: memref<72x96xf32, #tpu.memory_space<vmem>>, %arg3: memref<1x8xf32, #tpu.memory_space<vmem>>) attributes {dimension_semantics = [#tpu.dimension_semantics<arbitrary>], iteration_bounds = array<i64: 1>, scalar_prefetch = 0 : i64, scratch_operands = 0 : i64, tpu.core_type = #tpu.core_type<tc>, window_params = [{pipeline_mode = #tpu.pipeline_mode<synchronous>, transform_indices = @transform_0, window_bounds = array<i64: 8, 17>}, {pipeline_mode = #tpu.pipeline_mode<synchronous>, transform_indices = @transform_1, window_bounds = array<i64: 72, 96>}, {pipeline_mode = #tpu.pipeline_mode<synchronous>, transform_indices = @transform_2, window_bounds = array<i64: 1, 8>}]} {
    %c0 = arith.constant 0 : index
    %c0_0 = arith.constant 0 : index
    %0 = vector.load %arg1[%c0, %c0_0] : memref<8x17xf32, #tpu.memory_space<vmem>>, vector<8x17xf32>
    %c0_1 = arith.constant 0 : index
    %c0_2 = arith.constant 0 : index
    %1 = vector.load %arg2[%c0_1, %c0_2] : memref<72x96xf32, #tpu.memory_space<vmem>>, vector<17x96xf32>
    %c17 = arith.constant 17 : index
    %c0_3 = arith.constant 0 : index
    %2 = vector.load %arg2[%c17, %c0_3] : memref<72x96xf32, #tpu.memory_space<vmem>>, vector<1x96xf32>
    %cst = arith.constant dense<0.000000e+00> : vector<8x96xf32>
    %3 = tpu.matmul %0, %1, %cst {dimension_numbers = #tpu.dot_dimension_numbers<[1], [0], [0], [1], [0, 0, 1, 1], [], []>} : vector<8x17xf32>, vector<17x96xf32>, vector<8x96xf32> -> vector<8x96xf32>
    %4 = vector.broadcast %2 : vector<1x96xf32> to vector<8x96xf32>
    %5 = arith.addf %3, %4 : vector<8x96xf32>
    %6 = arith.negf %5 : vector<8x96xf32>
    %7 = math.exp %6 : vector<8x96xf32>
    %cst_4 = arith.constant 1.000000e+00 : f32
    %8 = vector.broadcast %cst_4 : f32 to vector<8x96xf32>
    %9 = arith.addf %8, %7 : vector<8x96xf32>
    %10 = arith.divf %8, %9 : vector<8x96xf32>
    %11 = math.tanh %5 : vector<8x96xf32>
    %12 = vector.extract_strided_slice %10 {offsets = [0, 64], sizes = [8, 32], strides = [1, 1]} : vector<8x96xf32> to vector<8x32xf32>
    %13 = vector.extract_strided_slice %10 {offsets = [0, 0], sizes = [8, 32], strides = [1, 1]} : vector<8x96xf32> to vector<8x32xf32>
    %14 = vector.extract_strided_slice %11 {offsets = [0, 32], sizes = [8, 32], strides = [1, 1]} : vector<8x96xf32> to vector<8x32xf32>
    %15 = arith.mulf %13, %14 : vector<8x32xf32>
    %16 = math.tanh %15 : vector<8x32xf32>
    %17 = arith.mulf %12, %16 : vector<8x32xf32>
    %c24 = arith.constant 24 : index
    %c0_5 = arith.constant 0 : index
    %18 = vector.load %arg2[%c24, %c0_5] : memref<72x96xf32, #tpu.memory_space<vmem>>, vector<32x96xf32>
    %c56 = arith.constant 56 : index
    %c0_6 = arith.constant 0 : index
    %19 = vector.load %arg2[%c56, %c0_6] : memref<72x96xf32, #tpu.memory_space<vmem>>, vector<1x96xf32>
    %cst_7 = arith.constant dense<0.000000e+00> : vector<8x96xf32>
    %20 = tpu.matmul %17, %18, %cst_7 {dimension_numbers = #tpu.dot_dimension_numbers<[1], [0], [0], [1], [0, 0, 1, 1], [], []>} : vector<8x32xf32>, vector<32x96xf32>, vector<8x96xf32> -> vector<8x96xf32>
    %21 = vector.broadcast %19 : vector<1x96xf32> to vector<8x96xf32>
    %22 = arith.addf %20, %21 : vector<8x96xf32>
    %23 = arith.negf %22 : vector<8x96xf32>
    %24 = math.exp %23 : vector<8x96xf32>
    %cst_8 = arith.constant 1.000000e+00 : f32
    %25 = vector.broadcast %cst_8 : f32 to vector<8x96xf32>
    %26 = arith.addf %25, %24 : vector<8x96xf32>
    %27 = arith.divf %25, %26 : vector<8x96xf32>
    %28 = math.tanh %22 : vector<8x96xf32>
    %29 = vector.extract_strided_slice %27 {offsets = [0, 64], sizes = [8, 32], strides = [1, 1]} : vector<8x96xf32> to vector<8x32xf32>
    %30 = vector.extract_strided_slice %27 {offsets = [0, 0], sizes = [8, 32], strides = [1, 1]} : vector<8x96xf32> to vector<8x32xf32>
    %31 = vector.extract_strided_slice %28 {offsets = [0, 32], sizes = [8, 32], strides = [1, 1]} : vector<8x96xf32> to vector<8x32xf32>
    %32 = arith.mulf %30, %31 : vector<8x32xf32>
    %33 = math.tanh %32 : vector<8x32xf32>
    %34 = arith.mulf %29, %33 : vector<8x32xf32>
    %c64 = arith.constant 64 : index
    %c0_9 = arith.constant 0 : index
    %35 = vector.load %arg2[%c64, %c0_9] : memref<72x96xf32, #tpu.memory_space<vmem>>, vector<1x32xf32>
    %c65 = arith.constant 65 : index
    %c0_10 = arith.constant 0 : index
    %36 = vector.load %arg2[%c65, %c0_10] : memref<72x96xf32, #tpu.memory_space<vmem>>, vector<1x32xf32>
    %c66 = arith.constant 66 : index
    %c0_11 = arith.constant 0 : index
    %37 = vector.load %arg2[%c66, %c0_11] : memref<72x96xf32, #tpu.memory_space<vmem>>, vector<1x32xf32>
    %38 = vector.broadcast %35 : vector<1x32xf32> to vector<8x32xf32>
    %39 = arith.mulf %17, %38 : vector<8x32xf32>
    %40 = vector.broadcast %36 : vector<1x32xf32> to vector<8x32xf32>
    %41 = arith.mulf %34, %40 : vector<8x32xf32>
    %42 = arith.addf %39, %41 : vector<8x32xf32>
    %43 = vector.broadcast %37 : vector<1x32xf32> to vector<8x32xf32>
    %44 = arith.addf %42, %43 : vector<8x32xf32>
    %cst_12 = arith.constant dense<0.000000e+00> : vector<8xf32>
    %45 = vector.multi_reduction <add>, %44, %cst_12 [1] : vector<8x32xf32> to vector<8xf32>
    %46 = vector.shape_cast %45 : vector<8xf32> to vector<8x1xf32>
    %47 = tpu.transpose %46, [1, 0] : vector<8x1xf32> -> vector<1x8xf32>
    %c0_13 = arith.constant 0 : index
    %c0_14 = arith.constant 0 : index
    %48 = vector.load %arg3[%c0_13, %c0_14] : memref<1x8xf32, #tpu.memory_space<vmem>>, vector<1x8xf32>
    tpu.vector_store %arg3[%c0_13, %c0_14], %47 {strides = array<i32>} : memref<1x8xf32, #tpu.memory_space<vmem>>, vector<1x8xf32>,
    return
  }
  func.func @transform_0(%arg0: i32) -> (i32, i32) {
    %c0_i32 = arith.constant 0 : i32
    %c0_i32_0 = arith.constant 0 : i32
    %c0_i32_1 = arith.constant 0 : i32
    return %c0_i32, %c0_i32_0 : i32, i32
  }
  func.func @transform_1(%arg0: i32) -> (i32, i32) {
    %c0_i32 = arith.constant 0 : i32
    %c0_i32_0 = arith.constant 0 : i32
    %c0_i32_1 = arith.constant 0 : i32
    return %c0_i32, %c0_i32_0 : i32, i32
  }
  func.func @transform_2(%arg0: i32) -> (i32, i32) {
    %c0_i32 = arith.constant 0 : i32
    %c0_i32_0 = arith.constant 0 : i32
    %c0_i32_1 = arith.constant 0 : i32
    return %c0_i32, %c0_i32_0 : i32, i32
  }
}

</mosaic_0001>

<bundles_post_ra>
// kernel: tpu_custom_call.1
= control target key start
LH: loop header
LB: loop body
LE: loop exit
PB: predicated region body
PF: predicated region fallthrough
CT: control target
= control target key end

     0   :  { %7 = vsyncpa [#allocation3], 0  ;;  %s559_s0 = inlined_call_operand.hbm [shape: f32[8,17], index: 0, kind: input, shape index: {}]   ;;  %s560_s1 = inlined_call_operand.hbm [shape: f32[72,96], index: 1, kind: input, shape index: {}]   ;;  %s561_s2 = inlined_call_operand.hbm [shape: f32[1,8], index: 2, kind: output, shape index: {}]  }
   0x1   :  { %8 = vsyncpa [#allocation6], 0 }
   0x2   :  { %9 = vsyncpa [#allocation4], 0  ;;  %s480_s9 = smov [#allocation2]   ;;  %s481_s11 = smov [#allocation5]  }
   0x3   :  { %s16_s10 = sshll.u32 %s480_s9, 4  ;;  %s25_s12 = sshll.u32 %s481_s11, 4  ;;  %s17_s10 = int_to_ptr.vmem [resolvable:$true] %s16_s10  ;;  %s505_s12 = int_to_ptr.vmem [resolvable:$true] %s25_s12 }
   0x4   :  { %s408_s15 = scalar_lea.hbm %s559_s0, 128 }
   0x5   :  { %p409_p0 = scmp.ne.s32.totalorder %s559_s0, %s408_s15  ;;  %p412_p1 = scmp.lt.u32.totalorder %s408_s15, %s559_s0 }
   0x7   :  { %p414_p2 = pnand %p412_p1, %p409_p0 }
   0x9   :  { %417 = shalt.err (!%p414_p2)
}
   0xa   :  { %s418_s20 = scalar_lea.vmem %s17_s10, 128  ;;  %p423_p4 = scmp.lt.s32.totalorder %s17_s10, %s17_s10 }
   0xb   :  { %p419_p3 = scmp.ne.s32.totalorder %s17_s10, %s418_s20  ;;  %p424_p5 = scmp.lt.s32.totalorder %s418_s20, %s418_s20 }
   0xd   :  { %p425_p6 = por %p424_p5, %p423_p4 }
   0xf   :  { %p426_p7 = pnand %p425_p6, %p419_p3 }
  0x11   :  { %429 = shalt.err (!%p426_p7)
}
  0x12   :  { %19 = dma.hbm_to_vmem [thread:$0]  %s559_s0, 128, %s17_s10, [#allocation3]  }
  0x13   :  { %s430_s25 = scalar_lea.hbm %s560_s1, 1152 }
  0x14   :  { %p431_p8 = scmp.ne.s32.totalorder %s560_s1, %s430_s25  ;;  %p434_p9 = scmp.lt.u32.totalorder %s430_s25, %s560_s1 }
  0x16   :  { %p436_p10 = pnand %p434_p9, %p431_p8 }
  0x18   :  { %439 = shalt.err (!%p436_p10)
}
  0x19   :  { %s440_s30 = scalar_lea.vmem %s505_s12, 1152  ;;  %p445_p12 = scmp.lt.s32.totalorder %s505_s12, %s505_s12 }
  0x1a   :  { %p441_p11 = scmp.ne.s32.totalorder %s505_s12, %s440_s30  ;;  %p446_p13 = scmp.lt.s32.totalorder %s440_s30, %s440_s30 }
  0x1c   :  { %p447_p0 = por %p446_p13, %p445_p12 }
  0x1e   :  { %p448_p1 = pnand %p447_p0, %p441_p11 }
  0x20   :  { %451 = shalt.err (!%p448_p1)
}
  0x21   :  { %s482_s0 = smov 128   ;;  %s483_s3 = smov 8  }
  0x22   :  { %31 = dma.hbm_to_vmem [thread:$0]  %s560_s1, 1152, %s505_s12, [#allocation6], %s482_s0, %s482_s0, %s483_s3  }
  0x23   :  { %474 = dma.done.wait [#allocation3], 128  }
  0x24   :  { %475 = vsyncadd [#allocation3], 4294967168 }
  0x25   :  { %476 = dma.done.wait [#allocation6], 1152  }
  0x26   :  { %477 = vsyncadd [#allocation6], 4294966144  ;;  %v484_v0 = vmov 0.0|0.0   ;;  %vm485_vm0 = vmmov 0   ;;  %v486_v1 = vmov 0.0   ;;  %v39_v2 = vld [vmem:[#allocation5] sm:$0xff] }
  0x27   :  { %373 = vmatprep.subr.bf16.mxu0 %v484_v0  ;;  %359 = vmatprep.mubr.msk.f32.mxu0 %vm485_vm0, %v486_v1  ;;  %v40_v3 = vld [vmem:[#allocation5 + $0x8] sm:$0xff]  ;;  %v41_v5 = vld [vmem:[#allocation5 + $0x10] sm:$0x1]  ;;  %vm51_vm1 = vcmask 1040384   ;;  %v38_v6 = vld [vmem:[#allocation2] sm:$0xff]  ;;  %vm47_vm2 = vcmask 138240  }
  0x28   :  { %376 = vmatprep.subr.bf16.mxu1 %v484_v0  ;;  %370 = vmatprep.mubr.msk.f32.mxu1 %vm485_vm0, %v486_v1  ;;  %v374_v4 = vpack.c.bf16 %v40_v3, %v39_v2  ;;  %v334_v7 = vld [vmem:[#allocation5 + $0x11] ss:$0 sm:$0xff]  ;;  %s487_s1 = smov 96   ;;  %v143_v18 = vld [vmem:[#allocation5 + $0x18] sm:$0xff]  ;;  %v144_v19 = vld [vmem:[#allocation5 + $0x20] sm:$0xff]  ;;  %s488_s6 = smov 64  }
  0x29   :  { %v145_v20 = vld [vmem:[#allocation5 + $0x28] sm:$0xff]  ;;  %v377_v21 = vpack.c.bf16 %v144_v19, %v143_v18  ;;  %v146_v22 = vld [vmem:[#allocation5 + $0x30] sm:$0xff]  ;;  %vm155_vm3 = vcmask 261120   ;;  %v338_v28 = vld [vmem:[#allocation5 + $0x38] ss:$0 sm:$0xff]  ;;  %s489_s7 = smov [#allocation7]  }
  0x2a   :  { %375 = vmatpush3.bf16.msra.mxu0 %v374_v4  ;;  %v380_v23 = vpack.c.bf16 %v146_v22, %v145_v20  ;;  %v341_v33 = vld [vmem:[#allocation5 + $0x40] ss:$0 sm:$0xff]  ;;  %v343_v34 = vld [vmem:[#allocation5 + $0x42] ss:$0 sm:$0xff]  ;;  %v342_v42 = vld [vmem:[#allocation5 + $0x41] ss:$0 sm:$0xff] }
  0x2b   :  { %357 = vmatprep.subr.mxu0 %v486_v1  ;;  %378 = vmatpush3.bf16.msra.mxu1 %v377_v21  ;;  %s324_s8 = sshll.u32 %s489_s7, 4  ;;  %vm316_vm4 = vcmask 57344   ;;  %s325_s8 = int_to_ptr.vmem [resolvable:$true] %s324_s8 }
  0x2c   :  { %379 = vmatprep.subr.bf16.mxu1 %v484_v0  ;;  %s452_s9 = scalar_lea.vmem %s325_s8, 16  ;;  %s456_s10 = scalar_lea.vmem %s325_s8, 32 }
  0x2d   :  { %p453_p2 = scmp.ne.s32.totalorder %s325_s8, %s452_s9  ;;  %p457_p3 = scmp.lt.s32.totalorder %s325_s8, %s325_s8 }
  0x2e   :  { %358 = vmatpush3.msk.msra.mxu0 %vm51_vm1, %v41_v5  ;;  %p458_p4 = scmp.lt.s32.totalorder %s456_s10, %s452_s9 }
  0x2f   :  { %360 = vmatmul.mubr.msk.f32.vlgmr.msra.gmra.mrb[0].mxu0 %vm47_vm2, %v38_v6  ;;  %381 = vmatpush3.bf16.msra.mxu1 %v380_v23 }
  0x30   :  { %p459_p5 = por %p458_p4, %p457_p3 }
  0x32   :  { %p460_p6 = pnand %p459_p5, %p453_p2 }
 0x102   :  { %v121_v8 = vpop.f32.mrb[0].mxu0 }
 0x103   :  { %v122_v9 = vadd.f32 %v334_v7, %v121_v8  ;;  %v361_v10 = vpop.f32.mrb[1].mxu0 }
 0x105   :  { %392 = vtanh.f32 %v122_v9  ;;  %v337_v12 = vmul.f32 -1.442695, %v122_v9 }
 0x107   :  { %394 = vpow2.f32 %v337_v12 }
 0x10f   :  { %v393_v11 = vpop.eup %392 }
 0x110   :  { %133 = vrot.lane.b32.xlu0 %v393_v11, %s487_s1 }
 0x111   :  { %v395_v13 = vpop.eup %394 }
 0x112   :  { %v128_v14 = vadd.f32 1.0, %v395_v13 }
 0x114   :  { %396 = vrcp.f32 %v128_v14 }
 0x11e   :  { %v397_v15 = vpop.eup %396 }
 0x182   :  { %v134_v16 = vpop.permute.xlu0 %133 }
 0x183   :  { %v136_v17 = vmul.f32 %v397_v15, %v134_v16 }
 0x185   :  { %398 = vtanh.f32 %v136_v17 }
 0x18f   :  { %v399_v24 = vpop.eup %398 }
 0x190   :  { %139 = vrot.lane.b32.xlu0 %v399_v24, %s488_s6 }
 0x202   :  { %v140_v25 = vpop.permute.xlu0 %139 }
 0x203   :  { %v142_v26 = vmul.f32 %v397_v15, %v140_v25 }
 0x205   :  { %153 = vrot.lane.b32.xlu1 %v142_v26, %s488_s6 }
 0x277   :  { %v154_v27 = vpop.permute.xlu1 %153 }
 0x278   :  { %371 = vmatmul.mubr.msk.f32.vlgmr.msra.gmra.mrb[0].mxu1 %vm155_vm3, %v154_v27 }
 0x34b   :  { %v224_v29 = vpop.f32.mrb[0].mxu1 }
 0x34c   :  { %v225_v30 = vadd.f32 %v338_v28, %v224_v29  ;;  %v372_v31 = vpop.f32.mrb[1].mxu1 }
 0x34e   :  { %400 = vtanh.f32 %v225_v30  ;;  %v340_v35 = vmul.f32 -1.442695, %v225_v30 }
 0x350   :  { %402 = vpow2.f32 %v340_v35 }
 0x358   :  { %v401_v32 = vpop.eup %400 }
 0x359   :  { %236 = vrot.lane.b32.xlu1 %v401_v32, %s487_s1 }
 0x35a   :  { %v403_v36 = vpop.eup %402 }
 0x35b   :  { %v231_v37 = vadd.f32 1.0, %v403_v36 }
 0x35d   :  { %254 = vrot.lane.b32.xlu1 %v341_v33, %s488_s6  ;;  %404 = vrcp.f32 %v231_v37 }
 0x361   :  { %273 = vrot.lane.b32.xlu1 %v343_v34, %s488_s6 }
 0x367   :  { %v405_v38 = vpop.eup %404 }
 0x3cb   :  { %v237_v39 = vpop.permute.xlu1 %236 }
 0x3cc   :  { %v239_v40 = vmul.f32 %v405_v38, %v237_v39 }
 0x3ce   :  { %406 = vtanh.f32 %v239_v40 }
 0x3cf   :  { %v255_v44 = vpop.permute.xlu1 %254 }
 0x3d0   :  { %v257_v47 = vmul.f32 %v255_v44, %v142_v26 }
 0x3d3   :  { %v274_v49 = vpop.permute.xlu1 %273 }
 0x3d8   :  { %v407_v41 = vpop.eup %406 }
 0x3d9   :  { %242 = vrot.lane.b32.xlu0 %v407_v41, %s488_s6 }
 0x3dd   :  { %263 = vrot.lane.b32.xlu0 %v342_v42, %s488_s6 }
 0x44b   :  { %v243_v43 = vpop.permute.xlu0 %242 }
 0x44c   :  { %v245_v45 = vmul.f32 %v405_v38, %v243_v43 }
 0x44f   :  { %v264_v46 = vpop.permute.xlu0 %263 }
 0x450   :  { %v266_v48 = vmul.f32 %v264_v46, %v245_v45 }
 0x452   :  { %v267_v50 = vadd.f32 %v266_v48, %v257_v47 }
 0x454   :  { %v276_v51 = vadd.f32 %v274_v49, %v267_v50 }
 0x456   :  { %278 = vrot.lane.b32.xlu0 %v276_v51, %s488_s6 }
 0x4c8   :  { %v279_v52 = vpop.permute.xlu0 %278 }
 0x4c9   :  { %v281_v53 = vsel %vm155_vm3, %v279_v52, 0.0 }
 0x4ca   :  { %282 = vadd.xlane.f32.xlu1 %v281_v53 }
 0x557   :  { %v283_v54 = vpop.xlane.xlu1 %282 }
 0x558   :  { %284 = vxpose.xlu0.b32.start.end [1/1] (short) (narrow) %v283_v54, 8 }
 0x5d8   :  { %v300_v55 = vpop.trf.xlu0 }
 0x5d9   :  { %317 = vst.msk [vmem:[#allocation7] sm:$0x1] %vm316_vm4, %v300_v55 }
 0x5da   :  { %463 = shalt.err (!%p460_p6)
}
 0x5db   :  { %s464_s13 = scalar_lea.hbm %s561_s2, 16 }
 0x5dc   :  { %p465_p7 = scmp.ne.s32.totalorder %s561_s2, %s464_s13  ;;  %p468_p8 = scmp.lt.u32.totalorder %s464_s13, %s561_s2 }
 0x5de   :  { %p470_p9 = pnand %p468_p8, %p465_p7 }
 0x5e0   :  { %473 = shalt.err (!%p470_p9)
}
 0x5e1   :  { %327 = dma.vmem_to_hbm [thread:$0]  %s325_s8, 16, %s561_s2, [#allocation4]  }
 0x5e2   :  { %478 = dma.done.wait [#allocation4], 16  }
 0x5e3   :  { %479 = vsyncadd [#allocation4], 4294967280 }
 0x5e4   :  { %331 = vsyncpa [#allocation3], 1 }
 0x5e5   :  { %332 = vsyncpa [#allocation6], 1 }
 0x5e6   :  { %333 = vsyncpa [#allocation4], 1 }

</bundles_post_ra>
